<compile_context>
chip_gen: v5e
topology: v5e:2x2
jax: 0.10.0
libtpu: 0.0.40
codegen_flags: <defaults>
</compile_context>

<pallas_src>
import functools

import jax
import jax.numpy as jnp
from jax.experimental import pallas as pl
from jax.experimental.pallas import tpu as pltpu


def _gac_kernel(obs_ref, eps_ref, w_ref, b_ref, sigma_ref, c_lp_ref, out_ref, *,
                action_dim):
    A = action_dim
    obs = obs_ref[...]                                   # (TB, D) f32
    eps = eps_ref[...]                                   # (TB, A) f32

    # Fused actor+critic head: one MXU pass over W = [Wa | Wv]  (D, A+1).
    hz = (jnp.dot(obs, w_ref[...], preferred_element_type=jnp.float32)
          + b_ref[...])                                  # (TB, A+1)
    mean = jnp.tanh(hz[:, :A])                           # (TB, A)
    v = hz[:, A:A + 1]                                   # (TB, 1)  (no tanh)

    sigma = sigma_ref[...]                               # (1, A)  softplus(std), VMEM-resident
    c_lp = c_lp_ref[0]                                   # SMEM scalar: sum(log sigma) + A*0.5*log(2pi)

    action = mean + sigma * eps                          # reparameterized sample

    # Normal log_prob summed over the action dim; (action-mean)/sigma == eps exactly.
    logp = -0.5 * jnp.sum(eps * eps, axis=-1, keepdims=True) - c_lp   # (TB, 1)

    # Single full-slab store: [action | log_pi | V]  -> (TB, A+2).
    out_ref[...] = jnp.concatenate([action, logp, v], axis=-1)


def _choose_tile(batch):
    """Row-block size.

    * small batches        -> one block (block == full array dims is legal)
    * 1024..2048 (mult 16) -> 2 equal blocks so both v7x TensorCores get work
    * larger batches       -> an even number of <=2048-row blocks (rows a
      multiple of 8); the last block may be ragged (Pallas masks it), so no
      host-side padding is ever needed.
    """
    if batch <= 2048:
        if batch >= 1024 and batch % 16 == 0:
            return batch // 2
        return batch
    n_blk = pl.cdiv(batch, 2048)
    if n_blk % 2:
        n_blk += 1
    tb = pl.cdiv(batch, n_blk)
    return ((tb + 7) // 8) * 8


@jax.jit
def gaussian_actor_critic_forward(obs, wa, ba, wv, bv, std, eps):
    obs = obs.astype(jnp.float32)
    eps = eps.astype(jnp.float32)
    B, D = obs.shape
    A = eps.shape[1]

    # --- parameter packing (tiny; changes only at optimizer steps) ---
    w = jnp.concatenate([wa, wv], axis=1).astype(jnp.float32)             # (D, A+1)
    b = jnp.concatenate([ba.reshape(1, A), bv.reshape(1, 1)],
                        axis=1).astype(jnp.float32)                       # (1, A+1)

    sigma = jax.nn.softplus(std.reshape(1, A)).astype(jnp.float32)        # (1, A)
    log_sigma = jnp.log(sigma)
    half_log_2pi = jnp.float32(0.5) * jnp.log(jnp.float32(2.0) * jnp.pi)
    c_lp = (jnp.sum(log_sigma) + A * half_log_2pi).reshape(1)             # (1,) SMEM scalar
    c_ent = A * (jnp.float32(0.5) + half_log_2pi) + jnp.sum(log_sigma)    # scalar, batch indep.

    # --- batch tiling: ragged last block, no padding, no row slicing ---
    tb = _choose_tile(B)
    n_blk = pl.cdiv(B, tb)

    rep = lambda i: (0, 0)   # weights / bias / sigma stay VMEM-resident across grid

    out = pl.pallas_call(
        functools.partial(_gac_kernel, action_dim=A),
        out_shape=jax.ShapeDtypeStruct((B, A + 2), jnp.float32),
        grid=(n_blk,),
        in_specs=[
            pl.BlockSpec((tb, D), lambda i: (i, 0)),       # obs row blocks
            pl.BlockSpec((tb, A), lambda i: (i, 0)),       # eps row blocks
            pl.BlockSpec((D, A + 1), rep),                 # fused weights [Wa|Wv]
            pl.BlockSpec((1, A + 1), rep),                 # fused bias
            pl.BlockSpec((1, A), rep),                     # sigma (VMEM)
            pl.BlockSpec(memory_space=pltpu.MemorySpace.SMEM),  # c_lp scalar (SMEM)
        ],
        out_specs=pl.BlockSpec((tb, A + 2), lambda i: (i, 0)),
        compiler_params=pltpu.CompilerParams(
            dimension_semantics=("parallel",)),            # shards batch over TCs on v7x
    )(obs, eps, w, b, sigma, c_lp)

    action = out[:, :A]
    log_pi_a = out[:, A:A + 1]
    v = out[:, A + 1:A + 2]
    ent = jnp.broadcast_to(c_ent, (B, 1))    # batch independent -> no kernel traffic
    return {"a": action, "log_pi_a": log_pi_a, "ent": ent, "V": v}


def _reference(obs, wa, ba, wv, bv, std, eps):
    mean = jnp.tanh(obs @ wa + ba)
    sigma = jax.nn.softplus(std)
    v = obs @ wv + bv
    a = mean + sigma * eps
    half_log_2pi = 0.5 * jnp.log(2.0 * jnp.pi)
    lp = jnp.sum(-0.5 * ((a - mean) / sigma) ** 2 - jnp.log(sigma) - half_log_2pi,
                 axis=-1, keepdims=True)
    ent = jnp.sum(jnp.broadcast_to(0.5 + half_log_2pi + jnp.log(sigma), mean.shape),
                  axis=-1, keepdims=True)
    return a, lp, ent, v


if __name__ == "__main__":
    key = jax.random.PRNGKey(0)
    k_obs, k_w1, k_w2, k_eps = jax.random.split(key, 4)

    B, state_dim, action_dim = 4, 32, 8
    obs = jax.random.normal(k_obs, (B, state_dim), jnp.float32)
    # layer_init(..., 0.001)-style tiny weights, zero biases, std = zeros.
    wa = 0.001 * jax.random.normal(k_w1, (state_dim, action_dim), jnp.float32)
    ba = jnp.zeros((1, action_dim), jnp.float32)
    wv = 0.001 * jax.random.normal(k_w2, (state_dim, 1), jnp.float32)
    bv = jnp.zeros((1, 1), jnp.float32)
    std = jnp.zeros((1, action_dim), jnp.float32)
    eps = jax.random.normal(k_eps, (B, action_dim), jnp.float32)

    out = gaussian_actor_critic_forward(obs, wa, ba, wv, bv, std, eps)
    jax.block_until_ready(out)

    a_ref, lp_ref, ent_ref, v_ref = _reference(obs, wa, ba, wv, bv, std, eps)
    assert jnp.allclose(out["a"], a_ref, atol=1e-5)
    assert jnp.allclose(out["log_pi_a"], lp_ref, atol=1e-5)
    assert jnp.allclose(out["ent"], ent_ref, atol=1e-5)
    assert jnp.allclose(out["V"], v_ref, atol=1e-5)

    # Second check: rollout-scale batch exercising the 2-block (no-pad) grid path.
    B2 = 1040
    obs2 = jax.random.normal(jax.random.PRNGKey(1), (B2, state_dim), jnp.float32)
    eps2 = jax.random.normal(jax.random.PRNGKey(2), (B2, action_dim), jnp.float32)
    out2 = gaussian_actor_critic_forward(obs2, wa, ba, wv, bv, std, eps2)
    jax.block_until_ready(out2)
    a2, lp2, ent2, v2 = _reference(obs2, wa, ba, wv, bv, std, eps2)
    assert jnp.allclose(out2["a"], a2, atol=1e-5)
    assert jnp.allclose(out2["log_pi_a"], lp2, atol=1e-5)
    assert jnp.allclose(out2["ent"], ent2, atol=1e-5)
    assert jnp.allclose(out2["V"], v2, atol=1e-5)

    # TODO(synk): rnn_states / non-identity body paths and the externally
    # supplied `action` branch (log_prob of a given action) are not covered by
    # this fused kernel; they are not exercised by the default forward.
    print("KERNEL_OK")
</pallas_src>

<mosaic_0001>
module attributes {stable_mosaic.version = 11 : i64} {
  func.func @_gac_kernel(%arg0: i32, %arg1: memref<4x32xf32, #tpu.memory_space<vmem>>, %arg2: memref<4x8xf32, #tpu.memory_space<vmem>>, %arg3: memref<32x9xf32, #tpu.memory_space<vmem>>, %arg4: memref<1x9xf32, #tpu.memory_space<vmem>>, %arg5: memref<1x8xf32, #tpu.memory_space<vmem>>, %arg6: memref<1xf32, #tpu.memory_space<smem>>, %arg7: memref<4x10xf32, #tpu.memory_space<vmem>>) attributes {dimension_semantics = [#tpu.dimension_semantics<parallel>], iteration_bounds = array<i64: 1>, scalar_prefetch = 0 : i64, scratch_operands = 0 : i64, tpu.core_type = #tpu.core_type<tc>, window_params = [{transform_indices = @transform_0, window_bounds = array<i64: 4, 32>}, {transform_indices = @transform_1, window_bounds = array<i64: 4, 8>}, {pipeline_mode = #tpu.pipeline_mode<synchronous>, transform_indices = @transform_2, window_bounds = array<i64: 32, 9>}, {pipeline_mode = #tpu.pipeline_mode<synchronous>, transform_indices = @transform_3, window_bounds = array<i64: 1, 9>}, {pipeline_mode = #tpu.pipeline_mode<synchronous>, transform_indices = @transform_4, window_bounds = array<i64: 1, 8>}, {transform_indices = @transform_5, window_bounds = array<i64: 1>}, {transform_indices = @transform_6, window_bounds = array<i64: 4, 10>}]} {
    %c0 = arith.constant 0 : index
    %c0_0 = arith.constant 0 : index
    %0 = vector.load %arg1[%c0, %c0_0] : memref<4x32xf32, #tpu.memory_space<vmem>>, vector<4x32xf32>
    %c0_1 = arith.constant 0 : index
    %c0_2 = arith.constant 0 : index
    %1 = vector.load %arg2[%c0_1, %c0_2] : memref<4x8xf32, #tpu.memory_space<vmem>>, vector<4x8xf32>
    %c0_3 = arith.constant 0 : index
    %c0_4 = arith.constant 0 : index
    %2 = vector.load %arg3[%c0_3, %c0_4] : memref<32x9xf32, #tpu.memory_space<vmem>>, vector<32x9xf32>
    %cst = arith.constant dense<0.000000e+00> : vector<4x9xf32>
    %3 = tpu.matmul %0, %2, %cst {dimension_numbers = #tpu.dot_dimension_numbers<[1], [0], [0], [1], [0, 0, 1, 1], [], []>} : vector<4x32xf32>, vector<32x9xf32>, vector<4x9xf32> -> vector<4x9xf32>
    %c0_5 = arith.constant 0 : index
    %c0_6 = arith.constant 0 : index
    %4 = vector.load %arg4[%c0_5, %c0_6] : memref<1x9xf32, #tpu.memory_space<vmem>>, vector<1x9xf32>
    %5 = vector.broadcast %4 : vector<1x9xf32> to vector<4x9xf32>
    %6 = arith.addf %3, %5 : vector<4x9xf32>
    %7 = vector.extract_strided_slice %6 {offsets = [0, 0], sizes = [4, 8], strides = [1, 1]} : vector<4x9xf32> to vector<4x8xf32>
    %8 = math.tanh %7 : vector<4x8xf32>
    %9 = vector.extract_strided_slice %6 {offsets = [0, 8], sizes = [4, 1], strides = [1, 1]} : vector<4x9xf32> to vector<4x1xf32>
    %c0_7 = arith.constant 0 : index
    %c0_8 = arith.constant 0 : index
    %10 = vector.load %arg5[%c0_7, %c0_8] : memref<1x8xf32, #tpu.memory_space<vmem>>, vector<1x8xf32>
    %c0_9 = arith.constant 0 : index
    %11 = memref.load %arg6[%c0_9] : memref<1xf32, #tpu.memory_space<smem>>
    %12 = vector.broadcast %10 : vector<1x8xf32> to vector<4x8xf32>
    %13 = arith.mulf %12, %1 : vector<4x8xf32>
    %14 = arith.addf %8, %13 : vector<4x8xf32>
    %15 = arith.mulf %1, %1 : vector<4x8xf32>
    %cst_10 = arith.constant dense<0.000000e+00> : vector<4xf32>
    %16 = vector.multi_reduction <add>, %15, %cst_10 [1] : vector<4x8xf32> to vector<4xf32>
    %17 = vector.shape_cast %16 : vector<4xf32> to vector<4x1xf32>
    %cst_11 = arith.constant -5.000000e-01 : f32
    %18 = vector.broadcast %cst_11 : f32 to vector<4x1xf32>
    %19 = arith.mulf %18, %17 : vector<4x1xf32>
    %20 = vector.broadcast %11 : f32 to vector<4x1xf32>
    %21 = arith.subf %19, %20 : vector<4x1xf32>
    %22 = tpu.concatenate %14, %21, %9 in 1 : vector<4x8xf32>, vector<4x1xf32>, vector<4x1xf32> -> vector<4x10xf32>
    %c0_12 = arith.constant 0 : index
    %c0_13 = arith.constant 0 : index
    %23 = vector.load %arg7[%c0_12, %c0_13] : memref<4x10xf32, #tpu.memory_space<vmem>>, vector<4x10xf32>
    tpu.vector_store %arg7[%c0_12, %c0_13], %22 {strides = array<i32>} : memref<4x10xf32, #tpu.memory_space<vmem>>, vector<4x10xf32>,
    return
  }
  func.func @transform_0(%arg0: i32) -> (i32, i32) {
    %c0_i32 = arith.constant 0 : i32
    %c0_i32_0 = arith.constant 0 : i32
    return %arg0, %c0_i32 : i32, i32
  }
  func.func @transform_1(%arg0: i32) -> (i32, i32) {
    %c0_i32 = arith.constant 0 : i32
    %c0_i32_0 = arith.constant 0 : i32
    return %arg0, %c0_i32 : i32, i32
  }
  func.func @transform_2(%arg0: i32) -> (i32, i32) {
    %c0_i32 = arith.constant 0 : i32
    %c0_i32_0 = arith.constant 0 : i32
    %c0_i32_1 = arith.constant 0 : i32
    return %c0_i32, %c0_i32_0 : i32, i32
  }
  func.func @transform_3(%arg0: i32) -> (i32, i32) {
    %c0_i32 = arith.constant 0 : i32
    %c0_i32_0 = arith.constant 0 : i32
    %c0_i32_1 = arith.constant 0 : i32
    return %c0_i32, %c0_i32_0 : i32, i32
  }
  func.func @transform_4(%arg0: i32) -> (i32, i32) {
    %c0_i32 = arith.constant 0 : i32
    %c0_i32_0 = arith.constant 0 : i32
    %c0_i32_1 = arith.constant 0 : i32
    return %c0_i32, %c0_i32_0 : i32, i32
  }
  func.func @transform_5(%arg0: i32) -> i32 {
    %c0_i32 = arith.constant 0 : i32
    %c0_i32_0 = arith.constant 0 : i32
    return %c0_i32 : i32
  }
  func.func @transform_6(%arg0: i32) -> (i32, i32) {
    %c0_i32 = arith.constant 0 : i32
    %c0_i32_0 = arith.constant 0 : i32
    return %arg0, %c0_i32 : i32, i32
  }
}

</mosaic_0001>

<bundles_post_ra>
// kernel: gaussian_actor_critic_forward.1
= control target key start
LH: loop header
LB: loop body
LE: loop exit
PB: predicated region body
PF: predicated region fallthrough
CT: control target
= control target key end

     0   :  { %vm67_vm0 = vcmask 60416   ;;  %vm34_vm1 = vcmask 261120   ;;  %vm78_vm2 = vcmask 64512   ;;  %vm80_vm3 = vcmask 72704   ;;  %s160_s2 = inlined_call_operand.vmem [shape: f32[32,9], index: 2, kind: input, shape index: {}]   ;;  %s161_s1 = inlined_call_operand.vmem [shape: f32[4,8], index: 1, kind: input, shape index: {}]   ;;  %s162_s4 = inlined_call_operand.vmem [shape: f32[1,8], index: 4, kind: input, shape index: {}]   ;;  %s163_s3 = inlined_call_operand.vmem [shape: f32[1,9], index: 3, kind: input, shape index: {}]   ;;  %s164_s0 = inlined_call_operand.vmem [shape: f32[4,32], index: 0, kind: input, shape index: {}]   ;;  %s165_s5 = inlined_call_operand.<no memory space> [shape: f32[1], index: 5, kind: input, shape index: {}]   ;;  %s166_s6 = inlined_call_operand.vmem [shape: f32[4,10], index: 6, kind: output, shape index: {}]  }
   0x1   :  { %v29_v0 = vld [vmem:[%s160_s2 + $0x18] sm:$0xff]  ;;  %v28_v1 = vld [vmem:[%s160_s2 + $0x10] sm:$0xff]  ;;  %v27_v2 = vld [vmem:[%s160_s2 + $0x8] sm:$0xff]  ;;  %v72_v17 = vstv %s165_s5  ;;  %vm82_vm4 = vcmask 76800  }
   0x2   :  { %50 = vmatpush.msra.mxu0 %v29_v0  ;;  %v25_v3 = vld [vmem:[%s161_s1] sm:$0xf] }
   0x3   :  { %v90_v4 = vld [vmem:[%s162_s4] ss:$0 sm:$0xff]  ;;  %v66_v5 = vmul.f32 %v25_v3, %v25_v3  ;;  %s94_s4 = smov 1  }
   0x4   :  { %51 = vmatpush.msra.mxu0 %v28_v1  ;;  %v26_v6 = vld [vmem:[%s160_s2] sm:$0xff]  ;;  %v64_v8 = vmul.f32 %v90_v4, %v25_v3 }
   0x5   :  { %v68_v7 = vsel %vm67_vm0, %v66_v5, 0.0  ;;  %v24_v9 = vld [vmem:[%s164_s0] sm:$0xf] }
   0x6   :  { %52 = vmatpush.msra.mxu0 %v27_v2  ;;  %69 = vadd.xlane.f32.xlu0 %v68_v7  ;;  %v91_v10 = vld [vmem:[%s163_s3] ss:$0 sm:$0xff] }
   0x8   :  { %53 = vmatpush.msra.mxu0 %v26_v6 }
   0x9   :  { %88 = vmatmul.msk.f32.vlgmr.msra.gmra.mxu0 %vm34_vm1, %v24_v9 }
  0x79   :  { %v70_v15 = vpop.xlane.xlu0 %69 }
  0x7a   :  { %v71_v16 = vmul.f32 -0.5, %v70_v15 }
  0x7c   :  { %v73_v18 = vsub.f32 %v71_v16, %v72_v17 }
  0x86   :  { %v55_v11 = vpop.f32.mrf.mxu0 }
  0x87   :  { %v56_v12 = vadd.f32 %v91_v10, %v55_v11 }
  0x89   :  { %92 = vtanh.f32 %v56_v12  ;;  %75 = vrot.lane.b32.xlu0 %v56_v12, %s94_s4 }
  0x8f   :  { %v93_v13 = vpop.eup %92 }
  0x90   :  { %v65_v14 = vadd.f32 %v93_v13, %v64_v8 }
  0x92   :  { %v79_v20 = vsel %vm78_vm2, %v65_v14, %v73_v18 }
  0xfb   :  { %v76_v19 = vpop.permute.xlu0 %75 }
  0xfc   :  { %v81_v21 = vsel %vm80_vm3, %v79_v20, %v76_v19 }
  0xfd   :  { %83 = vst.msk [vmem:[%s166_s6] sm:$0xf] %vm82_vm4, %v81_v21 }

</bundles_post_ra>
